<compile_context>
chip_gen: v5e
topology: v5e:2x2
jax: 0.10.0
libtpu: 0.0.40
codegen_flags: <defaults>
</compile_context>

<pallas_src>
import jax
import jax.numpy as jnp
from jax.experimental import pallas as pl
from jax.experimental.pallas import tpu as pltpu


# ---------------------------------------------------------------------------
# Kernels
# ---------------------------------------------------------------------------

def _mm_kernel(a_ref, b_ref, o_ref, acc_ref):
    """o = a @ b with an f32 VMEM accumulator over the k grid axis.

    Used when the output is stored narrow (bf16 intermediate), so the
    accumulator cannot live in the output block itself."""
    @pl.when(pl.program_id(2) == 0)
    def _():
        acc_ref[...] = jnp.zeros_like(acc_ref)

    acc_ref[...] += jnp.dot(a_ref[...], b_ref[...],
                            preferred_element_type=jnp.float32)

    @pl.when(pl.program_id(2) == pl.num_programs(2) - 1)
    def _():
        o_ref[...] = acc_ref[...].astype(o_ref.dtype)


def _mm_bias_relu_kernel(a_ref, b_ref, bias_ref, o_ref):
    """o = relu(a @ b + bias), accumulating directly into the f32 output block.

    The output BlockSpec ignores the k axis, so o_ref is VMEM-resident across
    the reduction; bias + ReLU run only in the finalize phase."""
    @pl.when(pl.program_id(2) == 0)
    def _():
        o_ref[...] = jnp.zeros_like(o_ref)

    o_ref[...] += jnp.dot(a_ref[...], b_ref[...],
                          preferred_element_type=jnp.float32)

    @pl.when(pl.program_id(2) == pl.num_programs(2) - 1)
    def _():
        o_ref[...] = jnp.maximum(o_ref[...] + bias_ref[...], 0.0)


# ---------------------------------------------------------------------------
# Padding / tiling helpers (all trace-time Python)
# ---------------------------------------------------------------------------

_M_BASE = 16      # sublane base (works for f32 and bf16 packing)
_L_BASE = 128     # lane base


def _round_up(v, m):
    return ((v + m - 1) // m) * m


def _largest_divisor_tile(dim, base, cap):
    """Largest multiple-of-`base` divisor of `dim` that is <= cap (dim % base == 0)."""
    t = (min(cap, dim) // base) * base
    while t > base and dim % t:
        t -= base
    return max(t, base)


def _choose_pad_and_tile(dim, base, cap, floor=256):
    """Pick (padded_dim, tile) with tile | padded_dim, tile % base == 0, tile <= cap.

    Strategy: smallest padding (starting from the minimal 8/128-style pad) whose
    best divisor tile is at least `floor`.  Bounded by round_up(dim, cap), i.e.
    never worse than the old round-up-to-tile behavior."""
    cap = max(base, (cap // base) * base)
    floor = max(base, min(cap, _round_up(floor, base)))
    dmin = _round_up(dim, base)
    if dmin <= cap:
        return dmin, dmin                      # single full-extent block
    limit = _round_up(dmin, cap)
    p = dmin
    while True:
        t = _largest_divisor_tile(p, base, cap)
        if t >= floor or p >= limit:
            return p, t
        p += base


def _pad_cast(a, shape, dtype):
    """Cast + zero-pad in one fused XLA pass (no-op when already matching)."""
    out = a.astype(dtype)
    pads = [(0, t - s) for s, t in zip(out.shape, shape)]
    if any(p != (0, 0) for p in pads):
        out = jnp.pad(out, pads)
    return out


# ---------------------------------------------------------------------------
# Generic tiled matmul on pre-padded operands
# ---------------------------------------------------------------------------

def _matmul_padded(a, b, bias=None, *, out_dtype, tm, tn, tk):
    """(a @ b) on operands whose dims are exact multiples of (tm, tk, tn).

    If `bias` is given, fuses relu(. + bias); out_dtype must then be float32
    (the accumulator lives in the output block)."""
    m, k = a.shape
    k2, n = b.shape
    assert k2 == k
    assert m % tm == 0 and n % tn == 0 and k % tk == 0, \
        ((m, k, n), (tm, tk, tn))

    grid = (m // tm, n // tn, k // tk)
    in_specs = [
        pl.BlockSpec((tm, tk), lambda i, j, kk: (i, kk)),
        pl.BlockSpec((tk, tn), lambda i, j, kk: (kk, j)),
    ]
    operands = [a, b]
    out_itemsize = jnp.dtype(out_dtype).itemsize

    # Double-buffered VMEM footprint (for the vmem limit below).
    vmem_bytes = 2 * (tm * tk * a.dtype.itemsize
                      + tk * tn * b.dtype.itemsize
                      + tm * tn * out_itemsize)

    if bias is not None:
        assert jnp.dtype(out_dtype) == jnp.dtype(jnp.float32)
        in_specs.append(pl.BlockSpec((1, tn), lambda i, j, kk: (0, j)))
        operands.append(bias)
        kernel = _mm_bias_relu_kernel
        scratch = []
        vmem_bytes += 2 * tn * bias.dtype.itemsize
        bias_bytes = bias.size * bias.dtype.itemsize
    else:
        kernel = _mm_kernel
        scratch = [pltpu.VMEM((tm, tn), jnp.float32)]
        vmem_bytes += tm * tn * 4
        bias_bytes = 0

    cost = pl.CostEstimate(
        flops=2 * m * k * n,
        transcendentals=0,
        bytes_accessed=(m * k * a.dtype.itemsize + k * n * b.dtype.itemsize
                        + m * n * out_itemsize + bias_bytes),
    )
    # Keep the explicit limit, capped at 48 MiB so it also fits v7x (64 MiB).
    vmem_limit = int(min(48 * 2**20, max(32 * 2**20, vmem_bytes * 3 // 2)))

    return pl.pallas_call(
        kernel,
        out_shape=jax.ShapeDtypeStruct((m, n), out_dtype),
        grid_spec=pltpu.PrefetchScalarGridSpec(
            num_scalar_prefetch=0,
            grid=grid,
            in_specs=in_specs,
            out_specs=pl.BlockSpec((tm, tn), lambda i, j, kk: (i, j)),
            scratch_shapes=scratch,
        ),
        compiler_params=pltpu.CompilerParams(
            dimension_semantics=("parallel", "parallel", "arbitrary"),
            vmem_limit_bytes=vmem_limit,
        ),
        cost_estimate=cost,
    )(*operands)


# ---------------------------------------------------------------------------
# GCN layer wrapper
# ---------------------------------------------------------------------------

def gcn_layer(x, adj, weight, bias, *, compute_dtype=jnp.bfloat16):
    """Equivalent of GCNLayer.forward(x, adj) = relu((adj @ x) @ W^T + b).

    x: (N, F_in), adj: (N, N), weight: (F_out, F_in) [PyTorch Linear layout],
    bias: (F_out,).  Returns (N, F_out) in float32.  MXU inputs run in
    `compute_dtype` (bf16 by default) with f32 accumulation.
    """
    n, f_in = x.shape
    assert adj.shape == (n, n)
    f_out, f_in2 = weight.shape
    assert f_in2 == f_in and bias.shape == (f_out,)

    # Node dim in its two roles (rows vs. reduction), feature dims.
    mp, tm = _choose_pad_and_tile(n, _M_BASE, 512)        # adj rows / output rows
    kp, tk = _choose_pad_and_tile(n, _L_BASE, 1024)       # adj cols / intermediate rows
    fip, tfi = _choose_pad_and_tile(f_in, _L_BASE, 1024)  # feature-in
    fop, tfo = _choose_pad_and_tile(f_out, _L_BASE, 512)  # feature-out

    adj_p = _pad_cast(adj, (mp, kp), compute_dtype)
    w_t_p = _pad_cast(weight.T, (fip, fop), compute_dtype)        # (F_in, F_out)
    bias_p = _pad_cast(bias.reshape(1, f_out), (1, fop), jnp.float32)

    if f_out <= f_in:
        # relu(adj @ (x @ W^T) + b): same math, fewer FLOPs, smaller intermediate.
        # x rows are padded to kp so xw feeds the adj matmul with no re-pad.
        x_p = _pad_cast(x, (kp, fip), compute_dtype)
        tm1 = _largest_divisor_tile(kp, _M_BASE, 512)
        xw_p = _matmul_padded(x_p, w_t_p, out_dtype=compute_dtype,
                              tm=tm1, tn=tfo, tk=tfi)              # (kp, fop) bf16
        out_p = _matmul_padded(adj_p, xw_p, bias_p, out_dtype=jnp.float32,
                               tm=tm, tn=tfo, tk=tk)               # (mp, fop) f32
    else:
        # relu((adj @ x) @ W^T + b)
        x_p = _pad_cast(x, (kp, fip), compute_dtype)
        h_p = _matmul_padded(adj_p, x_p, out_dtype=compute_dtype,
                             tm=tm, tn=tfi, tk=tk)                 # (mp, fip) bf16
        out_p = _matmul_padded(h_p, w_t_p, bias_p, out_dtype=jnp.float32,
                               tm=tm, tn=tfo, tk=tfi)              # (mp, fop) f32

    return out_p[:n, :f_out]


# ---------------------------------------------------------------------------
# Self-test
# ---------------------------------------------------------------------------

if __name__ == "__main__":
    key = jax.random.PRNGKey(0)

    def make_inputs(k, n, f_in, f_out):
        k_x, k_adj, k_w, k_b = jax.random.split(k, 4)
        x = jax.random.normal(k_x, (n, f_in), dtype=jnp.float32)
        # Symmetric, self-loop, row-normalized adjacency (typical GCN input).
        a = (jax.random.uniform(k_adj, (n, n)) > 0.9).astype(jnp.float32)
        a = jnp.maximum(a, a.T) + jnp.eye(n, dtype=jnp.float32)
        adj = a / jnp.sum(a, axis=1, keepdims=True)
        bound = 1.0 / jnp.sqrt(jnp.float32(f_in))
        w = jax.random.uniform(k_w, (f_out, f_in), minval=-bound, maxval=bound,
                               dtype=jnp.float32)
        b = jax.random.uniform(k_b, (f_out,), minval=-bound, maxval=bound,
                               dtype=jnp.float32)
        return x, adj, w, b

    def ref_fwd(x, adj, w, b):
        # Plain-JAX mirror of the PyTorch forward (f32).
        return jnp.maximum(jnp.dot(jnp.dot(adj, x), w.T) + b, 0.0)

    gcn = jax.jit(gcn_layer)

    k1, k2, k3 = jax.random.split(key, 3)
    # 1) Small aligned-ish shapes; 2) unaligned shapes exercising multi-tile
    #    grid + k accumulation; 3) F_out > F_in path.
    cases = [(k1, 16, 32, 32), (k2, 1032, 192, 96), (k3, 264, 32, 96)]

    for kk, n, f_in, f_out in cases:
        x, adj, w, b = make_inputs(kk, n, f_in, f_out)
        out = gcn(x, adj, w, b)
        jax.block_until_ready(out)
        ref = ref_fwd(x, adj, w, b)
        assert out.shape == ref.shape, (out.shape, ref.shape)
        err = float(jnp.max(jnp.abs(out - ref)))
        assert jnp.allclose(out, ref, atol=2e-2, rtol=2e-2), (n, f_in, f_out, err)

    print("KERNEL_OK")
</pallas_src>

<mosaic_0001>
module attributes {stable_mosaic.version = 11 : i64} {
  func.func @_mm_bias_relu_kernel(%arg0: i32, %arg1: i32, %arg2: i32, %arg3: memref<16x128xbf16, #tpu.memory_space<vmem>>, %arg4: memref<128x128xbf16, #tpu.memory_space<vmem>>, %arg5: memref<1x128xf32, #tpu.memory_space<vmem>>, %arg6: memref<16x128xf32, #tpu.memory_space<vmem>>) attributes {dimension_semantics = [#tpu.dimension_semantics<parallel>, #tpu.dimension_semantics<parallel>, #tpu.dimension_semantics<arbitrary>], iteration_bounds = array<i64: 1, 1, 1>, scalar_prefetch = 0 : i64, scratch_operands = 0 : i64, tpu.core_type = #tpu.core_type<tc>, window_params = [{transform_indices = @transform_0, window_bounds = array<i64: 16, 128>}, {transform_indices = @transform_1, window_bounds = array<i64: 128, 128>}, {transform_indices = @transform_2, window_bounds = array<i64: 1, 128>}, {transform_indices = @transform_3, window_bounds = array<i64: 16, 128>}]} {
    %c0_i32 = arith.constant 0 : i32
    %0 = arith.cmpi eq, %arg2, %c0_i32 : i32
    %1 = arith.extui %0 : i1 to i32
    %c0_i32_0 = arith.constant 0 : i32
    %2 = arith.cmpi ne, %1, %c0_i32_0 : i32
    scf.if %2 {
      %cst_10 = arith.constant 0.000000e+00 : f32
      %12 = vector.broadcast %cst_10 : f32 to vector<16x128xf32>
      %c0_11 = arith.constant 0 : index
      %c0_12 = arith.constant 0 : index
      %13 = vector.load %arg6[%c0_11, %c0_12] : memref<16x128xf32, #tpu.memory_space<vmem>>, vector<16x128xf32>
      tpu.vector_store %arg6[%c0_11, %c0_12], %12 {strides = array<i32>} : memref<16x128xf32, #tpu.memory_space<vmem>>, vector<16x128xf32>,
    } else {
    }
    %c0 = arith.constant 0 : index
    %c0_1 = arith.constant 0 : index
    %3 = vector.load %arg6[%c0, %c0_1] : memref<16x128xf32, #tpu.memory_space<vmem>>, vector<16x128xf32>
    %c0_2 = arith.constant 0 : index
    %c0_3 = arith.constant 0 : index
    %4 = vector.load %arg3[%c0_2, %c0_3] : memref<16x128xbf16, #tpu.memory_space<vmem>>, vector<16x128xbf16>
    %c0_4 = arith.constant 0 : index
    %c0_5 = arith.constant 0 : index
    %5 = vector.load %arg4[%c0_4, %c0_5] : memref<128x128xbf16, #tpu.memory_space<vmem>>, vector<128x128xbf16>
    %cst = arith.constant dense<0.000000e+00> : vector<16x128xf32>
    %6 = tpu.matmul %4, %5, %cst {dimension_numbers = #tpu.dot_dimension_numbers<[1], [0], [0], [1], [0, 0, 1, 1], [], []>} : vector<16x128xbf16>, vector<128x128xbf16>, vector<16x128xf32> -> vector<16x128xf32>
    %7 = arith.addf %3, %6 : vector<16x128xf32>
    %c0_6 = arith.constant 0 : index
    %c0_7 = arith.constant 0 : index
    %8 = vector.load %arg6[%c0_6, %c0_7] : memref<16x128xf32, #tpu.memory_space<vmem>>, vector<16x128xf32>
    tpu.vector_store %arg6[%c0_6, %c0_7], %7 {strides = array<i32>} : memref<16x128xf32, #tpu.memory_space<vmem>>, vector<16x128xf32>,
    %c0_i32_8 = arith.constant 0 : i32
    %9 = arith.cmpi eq, %arg2, %c0_i32_8 : i32
    %10 = arith.extui %9 : i1 to i32
    %c0_i32_9 = arith.constant 0 : i32
    %11 = arith.cmpi ne, %10, %c0_i32_9 : i32
    scf.if %11 {
      %c0_10 = arith.constant 0 : index
      %c0_11 = arith.constant 0 : index
      %12 = vector.load %arg6[%c0_10, %c0_11] : memref<16x128xf32, #tpu.memory_space<vmem>>, vector<16x128xf32>
      %c0_12 = arith.constant 0 : index
      %c0_13 = arith.constant 0 : index
      %13 = vector.load %arg5[%c0_12, %c0_13] : memref<1x128xf32, #tpu.memory_space<vmem>>, vector<1x128xf32>
      %14 = vector.broadcast %13 : vector<1x128xf32> to vector<16x128xf32>
      %15 = arith.addf %12, %14 : vector<16x128xf32>
      %cst_14 = arith.constant 0.000000e+00 : f32
      %16 = vector.broadcast %cst_14 : f32 to vector<16x128xf32>
      %17 = arith.maximumf %15, %16 : vector<16x128xf32>
      %c0_15 = arith.constant 0 : index
      %c0_16 = arith.constant 0 : index
      %18 = vector.load %arg6[%c0_15, %c0_16] : memref<16x128xf32, #tpu.memory_space<vmem>>, vector<16x128xf32>
      tpu.vector_store %arg6[%c0_15, %c0_16], %17 {strides = array<i32>} : memref<16x128xf32, #tpu.memory_space<vmem>>, vector<16x128xf32>,
    } else {
    }
    return
  }
  func.func @transform_0(%arg0: i32, %arg1: i32, %arg2: i32) -> (i32, i32) {
    %c0_i32 = arith.constant 0 : i32
    return %arg0, %arg2 : i32, i32
  }
  func.func @transform_1(%arg0: i32, %arg1: i32, %arg2: i32) -> (i32, i32) {
    %c0_i32 = arith.constant 0 : i32
    return %arg2, %arg1 : i32, i32
  }
  func.func @transform_2(%arg0: i32, %arg1: i32, %arg2: i32) -> (i32, i32) {
    %c0_i32 = arith.constant 0 : i32
    %c0_i32_0 = arith.constant 0 : i32
    return %c0_i32, %arg1 : i32, i32
  }
  func.func @transform_3(%arg0: i32, %arg1: i32, %arg2: i32) -> (i32, i32) {
    %c0_i32 = arith.constant 0 : i32
    return %arg0, %arg1 : i32, i32
  }
}

module attributes {stable_mosaic.version = 11 : i64} {
  func.func @_mm_kernel(%arg0: i32, %arg1: i32, %arg2: i32, %arg3: memref<128x128xbf16, #tpu.memory_space<vmem>>, %arg4: memref<128x128xbf16, #tpu.memory_space<vmem>>, %arg5: memref<128x128xbf16, #tpu.memory_space<vmem>>, %arg6: memref<128x128xf32, #tpu.memory_space<vmem>>) attributes {dimension_semantics = [#tpu.dimension_semantics<parallel>, #tpu.dimension_semantics<parallel>, #tpu.dimension_semantics<arbitrary>], iteration_bounds = array<i64: 1, 1, 1>, scalar_prefetch = 0 : i64, scratch_operands = 1 : i64, tpu.core_type = #tpu.core_type<tc>, window_params = [{transform_indices = @transform_0, window_bounds = array<i64: 128, 128>}, {transform_indices = @transform_1, window_bounds = array<i64: 128, 128>}, {transform_indices = @transform_2, window_bounds = array<i64: 128, 128>}]} {
    %c0_i32 = arith.constant 0 : i32
    %0 = arith.cmpi eq, %arg2, %c0_i32 : i32
    %1 = arith.extui %0 : i1 to i32
    %c0_i32_0 = arith.constant 0 : i32
    %2 = arith.cmpi ne, %1, %c0_i32_0 : i32
    scf.if %2 {
      %cst_10 = arith.constant 0.000000e+00 : f32
      %12 = vector.broadcast %cst_10 : f32 to vector<128x128xf32>
      %c0_11 = arith.constant 0 : index
      %c0_12 = arith.constant 0 : index
      %13 = vector.load %arg6[%c0_11, %c0_12] : memref<128x128xf32, #tpu.memory_space<vmem>>, vector<128x128xf32>
      tpu.vector_store %arg6[%c0_11, %c0_12], %12 {strides = array<i32>} : memref<128x128xf32, #tpu.memory_space<vmem>>, vector<128x128xf32>,
    } else {
    }
    %c0 = arith.constant 0 : index
    %c0_1 = arith.constant 0 : index
    %3 = vector.load %arg6[%c0, %c0_1] : memref<128x128xf32, #tpu.memory_space<vmem>>, vector<128x128xf32>
    %c0_2 = arith.constant 0 : index
    %c0_3 = arith.constant 0 : index
    %4 = vector.load %arg3[%c0_2, %c0_3] : memref<128x128xbf16, #tpu.memory_space<vmem>>, vector<128x128xbf16>
    %c0_4 = arith.constant 0 : index
    %c0_5 = arith.constant 0 : index
    %5 = vector.load %arg4[%c0_4, %c0_5] : memref<128x128xbf16, #tpu.memory_space<vmem>>, vector<128x128xbf16>
    %cst = arith.constant dense<0.000000e+00> : vector<128x128xf32>
    %6 = tpu.matmul %4, %5, %cst {dimension_numbers = #tpu.dot_dimension_numbers<[1], [0], [0], [1], [0, 0, 1, 1], [], []>} : vector<128x128xbf16>, vector<128x128xbf16>, vector<128x128xf32> -> vector<128x128xf32>
    %7 = arith.addf %3, %6 : vector<128x128xf32>
    %c0_6 = arith.constant 0 : index
    %c0_7 = arith.constant 0 : index
    %8 = vector.load %arg6[%c0_6, %c0_7] : memref<128x128xf32, #tpu.memory_space<vmem>>, vector<128x128xf32>
    tpu.vector_store %arg6[%c0_6, %c0_7], %7 {strides = array<i32>} : memref<128x128xf32, #tpu.memory_space<vmem>>, vector<128x128xf32>,
    %c0_i32_8 = arith.constant 0 : i32
    %9 = arith.cmpi eq, %arg2, %c0_i32_8 : i32
    %10 = arith.extui %9 : i1 to i32
    %c0_i32_9 = arith.constant 0 : i32
    %11 = arith.cmpi ne, %10, %c0_i32_9 : i32
    scf.if %11 {
      %c0_10 = arith.constant 0 : index
      %c0_11 = arith.constant 0 : index
      %12 = vector.load %arg6[%c0_10, %c0_11] : memref<128x128xf32, #tpu.memory_space<vmem>>, vector<128x128xf32>
      %13 = arith.truncf %12 : vector<128x128xf32> to vector<128x128xbf16>
      %c0_12 = arith.constant 0 : index
      %c0_13 = arith.constant 0 : index
      %14 = vector.load %arg5[%c0_12, %c0_13] : memref<128x128xbf16, #tpu.memory_space<vmem>>, vector<128x128xbf16>
      tpu.vector_store %arg5[%c0_12, %c0_13], %13 {strides = array<i32>} : memref<128x128xbf16, #tpu.memory_space<vmem>>, vector<128x128xbf16>,
    } else {
    }
    return
  }
  func.func @transform_0(%arg0: i32, %arg1: i32, %arg2: i32) -> (i32, i32) {
    %c0_i32 = arith.constant 0 : i32
    return %arg0, %arg2 : i32, i32
  }
  func.func @transform_1(%arg0: i32, %arg1: i32, %arg2: i32) -> (i32, i32) {
    %c0_i32 = arith.constant 0 : i32
    return %arg2, %arg1 : i32, i32
  }
  func.func @transform_2(%arg0: i32, %arg1: i32, %arg2: i32) -> (i32, i32) {
    %c0_i32 = arith.constant 0 : i32
    return %arg0, %arg1 : i32, i32
  }
}

</mosaic_0001>

<bundles_post_ra>
// kernel: gcn_layer.3
= control target key start
LH: loop header
LB: loop body
LE: loop exit
PB: predicated region body
PF: predicated region fallthrough
CT: control target
= control target key end

     0   :  { %s278_s0 = inlined_call_operand.vmem [shape: bf16[16,128], index: 0, kind: input, shape index: {}]   ;;  %s279_s1 = inlined_call_operand.vmem [shape: bf16[128,128], index: 1, kind: input, shape index: {}]   ;;  %s280_s2 = inlined_call_operand.vmem [shape: f32[1,128], index: 2, kind: input, shape index: {}]   ;;  %s281_s3 = inlined_call_operand.hbm [shape: f32[16,128], index: 3, kind: output, shape index: {}]  }
   0x1   :  { %v190_v0 = vld [vmem:[%s279_s1 + $0x38] sm:$0xff]  ;;  %v189_v1 = vld [vmem:[%s279_s1 + $0x30] sm:$0xff] }
   0x2   :  { %95 = vmatpush.bf16.msra.mxu0 %v190_v0 }
   0x3   :  { %8 = vsyncpa [#allocation3], 0  ;;  %v188_v2 = vld [vmem:[%s279_s1 + $0x28] sm:$0xff]  ;;  %v187_v3 = vld [vmem:[%s279_s1 + $0x20] sm:$0xff]  ;;  %s222_s5 = smov [#allocation2]   ;;  %s224_s9 = smov 8  }
   0x4   :  { %v186_v4 = vld [vmem:[%s279_s1 + $0x18] sm:$0xff]  ;;  %v185_v5 = vld [vmem:[%s279_s1 + $0x10] sm:$0xff]  ;;  %v184_v6 = vld [vmem:[%s279_s1 + $0x8] sm:$0xff]  ;;  %s132_s6 = sshll.u32 %s222_s5, 4  ;;  %s133_s6 = int_to_ptr.vmem [resolvable:$true] %s132_s6 }
   0x5   :  { %v183_v7 = vld [vmem:[%s279_s1] sm:$0xff]  ;;  %s134_s1 = sshll.u32 %s281_s3, 4  ;;  %s135_s1 = int_to_ptr.hbm [resolvable:$true] %s134_s1 }
   0x6   :  { %96 = vmatpush.bf16.msra.mxu0 %v189_v1  ;;  %v182_v8 = vld [vmem:[%s278_s0] sm:$0xff]  ;;  %s223_s0 = smov 128  }
   0x7   :  { %v195_v9 = vld [vmem:[%s280_s2] ss:$0 sm:$0xff] }
   0xa   :  { %97 = vmatpush.bf16.msra.mxu0 %v188_v2 }
   0xe   :  { %98 = vmatpush.bf16.msra.mxu0 %v187_v3 }
  0x12   :  { %99 = vmatpush.bf16.msra.mxu0 %v186_v4 }
  0x16   :  { %100 = vmatpush.bf16.msra.mxu0 %v185_v5 }
  0x1a   :  { %101 = vmatpush.bf16.msra.mxu0 %v184_v6 }
  0x1e   :  { %102 = vmatpush.bf16.msra.mxu0 %v183_v7 }
  0x21   :  { %103 = vmatmul.bf16.vlgmr.msra.gmra.mxu0 %v182_v8 }
  0x9e   :  { %v104_v10 = vpop.f32.mrf.mxu0 }
  0x9f   :  { %v122_v11 = vadd.f32 %v195_v9, %v104_v10 }
  0xa1   :  { %v124_v12 = vmax.f32 %v122_v11, 0.0 }
  0xa3   :  { %126 = vst [vmem:[#allocation2] sm:$0xff] %v124_v12 }
  0xa6   :  { %v106_v13 = vpop.f32.mrf.mxu0 }
  0xa7   :  { %v123_v14 = vadd.f32 %v195_v9, %v106_v13 }
  0xa9   :  { %v125_v15 = vmax.f32 %v123_v14, 0.0 }
  0xab   :  { %127 = vst [vmem:[#allocation2 + $0x8] sm:$0xff] %v125_v15 }
  0xac   :  { %140 = dma.vmem_to_hbm [thread:$0]  %s133_s6, 256, %s135_s1, [#allocation3], %s223_s0, %s223_s0, %s224_s9  }
  0xad   :  { %220 = dma.done.wait [#allocation3], 256  }
  0xae   :  { %221 = vsyncadd [#allocation3], 4294967040 }
  0xaf   :  { %145 = vsyncpa [#allocation3], 1 }

// kernel: gcn_layer.2
= control target key start
LH: loop header
LB: loop body
LE: loop exit
PB: predicated region body
PF: predicated region fallthrough
CT: control target
= control target key end

     0   :  { %s549_s1 = inlined_call_operand.vmem [shape: bf16[128,128], index: 1, kind: input, shape index: {}]   ;;  %s550_s0 = inlined_call_operand.vmem [shape: bf16[128,128], index: 0, kind: input, shape index: {}]   ;;  %s551_s2 = inlined_call_operand.vmem [shape: bf16[128,128], index: 2, kind: output, shape index: {}]  }
   0x1   :  { %v390_v0 = vld [vmem:[%s549_s1 + $0x38] sm:$0xff]  ;;  %v389_v1 = vld [vmem:[%s549_s1 + $0x30] sm:$0xff]  ;;  %v388_v2 = vld [vmem:[%s549_s1 + $0x28] sm:$0xff] }
   0x2   :  { %175 = vmatpush.bf16.msra.mxu0 %v390_v0  ;;  %438 = vmatpush.bf16.msra.mxu1 %v390_v0  ;;  %v387_v3 = vld [vmem:[%s549_s1 + $0x20] sm:$0xff]  ;;  %v386_v4 = vld [vmem:[%s549_s1 + $0x18] sm:$0xff]  ;;  %v385_v5 = vld [vmem:[%s549_s1 + $0x10] sm:$0xff] }
   0x3   :  { %439 = vmatpush.bf16.msra.mxu2 %v390_v0  ;;  %440 = vmatpush.bf16.msra.mxu3 %v390_v0  ;;  %v384_v6 = vld [vmem:[%s549_s1 + $0x8] sm:$0xff]  ;;  %v383_v7 = vld [vmem:[%s549_s1] sm:$0xff]  ;;  %v377_v9 = vld [vmem:[%s550_s0 + $0x10] sm:$0xff] }
   0x4   :  { %v375_v8 = vld [vmem:[%s550_s0] sm:$0xff]  ;;  %v381_v11 = vld [vmem:[%s550_s0 + $0x30] sm:$0xff]  ;;  %v376_v12 = vld [vmem:[%s550_s0 + $0x8] sm:$0xff] }
   0x5   :  { %v379_v10 = vld [vmem:[%s550_s0 + $0x20] sm:$0xff]  ;;  %v378_v13 = vld [vmem:[%s550_s0 + $0x18] sm:$0xff]  ;;  %v380_v14 = vld [vmem:[%s550_s0 + $0x28] sm:$0xff] }
   0x6   :  { %176 = vmatpush.bf16.msra.mxu0 %v389_v1  ;;  %441 = vmatpush.bf16.msra.mxu1 %v389_v1  ;;  %v382_v15 = vld [vmem:[%s550_s0 + $0x38] sm:$0xff] }
   0x7   :  { %442 = vmatpush.bf16.msra.mxu2 %v389_v1  ;;  %443 = vmatpush.bf16.msra.mxu3 %v389_v1 }
   0xa   :  { %177 = vmatpush.bf16.msra.mxu0 %v388_v2  ;;  %444 = vmatpush.bf16.msra.mxu1 %v388_v2 }
   0xb   :  { %445 = vmatpush.bf16.msra.mxu2 %v388_v2  ;;  %446 = vmatpush.bf16.msra.mxu3 %v388_v2 }
   0xe   :  { %178 = vmatpush.bf16.msra.mxu0 %v387_v3  ;;  %447 = vmatpush.bf16.msra.mxu1 %v387_v3 }
   0xf   :  { %448 = vmatpush.bf16.msra.mxu2 %v387_v3  ;;  %449 = vmatpush.bf16.msra.mxu3 %v387_v3 }
  0x12   :  { %179 = vmatpush.bf16.msra.mxu0 %v386_v4  ;;  %450 = vmatpush.bf16.msra.mxu1 %v386_v4 }
  0x13   :  { %451 = vmatpush.bf16.msra.mxu2 %v386_v4  ;;  %452 = vmatpush.bf16.msra.mxu3 %v386_v4 }
  0x16   :  { %180 = vmatpush.bf16.msra.mxu0 %v385_v5  ;;  %453 = vmatpush.bf16.msra.mxu1 %v385_v5 }
  0x17   :  { %454 = vmatpush.bf16.msra.mxu2 %v385_v5  ;;  %455 = vmatpush.bf16.msra.mxu3 %v385_v5 }
  0x1a   :  { %181 = vmatpush.bf16.msra.mxu0 %v384_v6  ;;  %456 = vmatpush.bf16.msra.mxu1 %v384_v6 }
  0x1b   :  { %457 = vmatpush.bf16.msra.mxu2 %v384_v6  ;;  %458 = vmatpush.bf16.msra.mxu3 %v384_v6 }
  0x1e   :  { %182 = vmatpush.bf16.msra.mxu0 %v383_v7  ;;  %459 = vmatpush.bf16.msra.mxu1 %v383_v7 }
  0x1f   :  { %460 = vmatpush.bf16.msra.mxu2 %v383_v7  ;;  %461 = vmatpush.bf16.msra.mxu3 %v383_v7 }
  0x21   :  { %183 = vmatmul.bf16.vlgmr.msra.gmra.mxu0 %v375_v8  ;;  %193 = vmatmul.bf16.vlgmr.msra.gmra.mxu1 %v377_v9 }
  0x22   :  { %203 = vmatmul.bf16.vlgmr.msra.gmra.mxu2 %v379_v10  ;;  %213 = vmatmul.bf16.vlgmr.msra.gmra.mxu3 %v381_v11 }
  0x31   :  { %188 = vmatmul.bf16.gmra.mxu0 %v376_v12  ;;  %198 = vmatmul.bf16.gmra.mxu1 %v378_v13 }
  0x32   :  { %208 = vmatmul.bf16.gmra.mxu2 %v380_v14  ;;  %218 = vmatmul.bf16.gmra.mxu3 %v382_v15 }
  0x9e   :  { %v184_v16 = vpop.f32.mrf.mxu0  ;;  %v194_v17 = vpop.f32.mrf.mxu1 }
  0xa5   :  { %v204_v18 = vpop.f32.mrf.mxu2  ;;  %v214_v19 = vpop.f32.mrf.mxu3 }
  0xa6   :  { %v186_v20 = vpop.f32.mrf.mxu0  ;;  %v196_v21 = vpop.f32.mrf.mxu1 }
  0xa7   :  { %v394_v22 = vpack.c.bf16 %v186_v20, %v184_v16  ;;  %v404_v23 = vpack.c.bf16 %v196_v21, %v194_v17 }
  0xa9   :  { %395 = vst [vmem:[%s551_s2] sm:$0xff] %v394_v22  }
  0xaa   :  { %432 = vst [vmem:[%s551_s2 + $0x10] sm:$0xff] %v404_v23  }
  0xad   :  { %v206_v24 = vpop.f32.mrf.mxu2  ;;  %v216_v25 = vpop.f32.mrf.mxu3 }
  0xae   :  { %v414_v26 = vpack.c.bf16 %v206_v24, %v204_v18  ;;  %v424_v27 = vpack.c.bf16 %v216_v25, %v214_v19  ;;  %v189_v28 = vpop.f32.mrf.mxu0  ;;  %v199_v29 = vpop.f32.mrf.mxu1 }
  0xb0   :  { %434 = vst [vmem:[%s551_s2 + $0x20] sm:$0xff] %v414_v26  }
  0xb1   :  { %436 = vst [vmem:[%s551_s2 + $0x30] sm:$0xff] %v424_v27  }
  0xb5   :  { %v209_v30 = vpop.f32.mrf.mxu2  ;;  %v219_v31 = vpop.f32.mrf.mxu3 }
  0xb6   :  { %v191_v32 = vpop.f32.mrf.mxu0  ;;  %v201_v33 = vpop.f32.mrf.mxu1 }
  0xb7   :  { %v399_v34 = vpack.c.bf16 %v191_v32, %v189_v28  ;;  %v409_v35 = vpack.c.bf16 %v201_v33, %v199_v29 }
  0xb9   :  { %431 = vst [vmem:[%s551_s2 + $0x8] sm:$0xff] %v399_v34  }
  0xba   :  { %433 = vst [vmem:[%s551_s2 + $0x18] sm:$0xff] %v409_v35  }
  0xbd   :  { %v211_v36 = vpop.f32.mrf.mxu2  ;;  %v221_v37 = vpop.f32.mrf.mxu3 }
  0xbe   :  { %v419_v38 = vpack.c.bf16 %v211_v36, %v209_v30  ;;  %v429_v39 = vpack.c.bf16 %v221_v37, %v219_v31 }
  0xc0   :  { %435 = vst [vmem:[%s551_s2 + $0x28] sm:$0xff] %v419_v38  }
  0xc1   :  { %437 = vst [vmem:[%s551_s2 + $0x38] sm:$0xff] %v429_v39  }

</bundles_post_ra>
